<compile_context>
chip_gen: v5e
topology: v5e:2x2
jax: 0.10.0
libtpu: 0.0.40
codegen_flags: <defaults>
</compile_context>

<pallas_src>
import functools

import jax
import jax.numpy as jnp
from jax.experimental import pallas as pl
from jax.experimental.pallas import tpu as pltpu


# ----------------------------- config (synthetic) -----------------------------
VOCAB_SIZE = 64
HIDDEN = 32
MAX_POS = 64
TYPE_VOCAB = 2
MAX_2D_POS = 128
COORD_SIZE = 6          # 4 * 6 + 2 * 4 == 32 == HIDDEN
SHAPE_SIZE = 4
PAD_TOKEN_ID = 1
LAYER_NORM_EPS = 1e-12

BATCH = 2
SEQ = 8

# Fused-table layout: 8 segments of 128 rows each, HIDDEN (=32) lanes wide.
SEG_ROWS = 128                       # one full vreg lane width per segment
NUM_SEGS = 8
POS_ROW_OFF = VOCAB_SIZE             # seg0: word rows [0,64), pos rows [64,128)
LR_ROW_OFF = TYPE_VOCAB              # seg1: tok rows [0,2), line_rank rows [2,66)
LRI_ROW_OFF = TYPE_VOCAB + MAX_POS   # seg1: line_rank_inner rows [66,70)
NUM_ID_COLS = 11

TOKEN_TILE = 8                       # multiple of 8 sublanes; raise to 128/256 at scale


# --------------------------------- kernel -------------------------------------
def embeddings_kernel(ids_ref, table_ref, gb_ref, out_ref, *, eps, hidden):
    """ids:   (TILE, 11) int32 segment-local ids.
       table: (8*128, hidden) f32 fused embedding table (VMEM-resident).
       gb:    (2, hidden) f32 packed [gamma; beta].
       out:   (TILE, hidden) f32."""
    ids = ids_ref[...]
    n = ids.shape[0]
    iota = jax.lax.broadcasted_iota(jnp.int32, (n, SEG_ROWS), 1)

    def onehot(col):
        # NOTE: out-of-range ids produce an all-zero row (gathers zero) rather
        # than raising like torch.nn.Embedding would.
        return (iota == ids[:, col:col + 1]).astype(jnp.float32)

    # Per-segment multi-hot (only one (TILE, 128) segment live at a time) and
    # 8 accumulating K=128 MXU matmuls against the matching table slice.
    seg_hots = (
        onehot(0) + onehot(1),               # seg0: word + absolute position
        onehot(2) + onehot(3) + onehot(4),   # seg1: token type + line rank + line rank inner
        onehot(5),                           # seg2: x_pos (left)
        onehot(6),                           # seg3: y_pos (upper)
        onehot(7),                           # seg4: x_pos (right)
        onehot(8),                           # seg5: y_pos (lower)
        onehot(9),                           # seg6: h_pos
        onehot(10),                          # seg7: w_pos
    )
    emb = jnp.zeros((n, hidden), jnp.float32)
    for s, hot in enumerate(seg_hots):
        emb = emb + jnp.dot(hot, table_ref[s * SEG_ROWS:(s + 1) * SEG_ROWS, :],
                            preferred_element_type=jnp.float32)

    # LayerNorm over the full (real) hidden width -- no lane mask needed.
    mean = jnp.mean(emb, axis=-1, keepdims=True)
    diff = emb - mean
    var = jnp.mean(diff * diff, axis=-1, keepdims=True)
    normed = diff * jax.lax.rsqrt(var + eps)
    out_ref[...] = normed * gb_ref[0:1, :] + gb_ref[1:2, :]
    # dropout: identity in eval mode


# ------------------------ one-time parameter preprocessing ---------------------
def prepare_params(params):
    """Hoisted out of the per-call path: fuse all 9 embedding tables into one
    (1024, 32) lookup table and pack LayerNorm gamma/beta into one (2, 32)."""
    H, C, Sz = HIDDEN, COORD_SIZE, SHAPE_SIZE

    def seg(*placements):
        s = jnp.zeros((SEG_ROWS, H), jnp.float32)
        for row0, col0, tab in placements:
            s = s.at[row0:row0 + tab.shape[0], col0:col0 + tab.shape[1]].set(tab)
        return s

    table = jnp.concatenate([
        seg((0, 0, params["word"]), (POS_ROW_OFF, 0, params["pos"])),
        seg((0, 0, params["tok"]), (LR_ROW_OFF, 0, params["line_rank"]),
            (LRI_ROW_OFF, 0, params["line_rank_inner"])),
        seg((0, 0 * C, params["x_pos"])),          # left  x  -> cols [0, 6)
        seg((0, 1 * C, params["y_pos"])),          # upper y  -> cols [6, 12)
        seg((0, 2 * C, params["x_pos"])),          # right x  -> cols [12, 18)
        seg((0, 3 * C, params["y_pos"])),          # lower y  -> cols [18, 24)
        seg((0, 4 * C, params["h_pos"])),          # height   -> cols [24, 28)
        seg((0, 4 * C + Sz, params["w_pos"])),     # width    -> cols [28, 32)
    ], axis=0)                                     # (1024, 32)

    gb = jnp.stack([params["ln_gamma"], params["ln_beta"]], axis=0)  # (2, 32)
    return {"table": table.astype(jnp.float32), "gamma_beta": gb.astype(jnp.float32)}


# --------------------------------- wrapper -------------------------------------
@functools.partial(jax.jit, static_argnames=("past_key_values_length",))
def layout_roberta_embeddings(prepared, input_ids, line_bbox, line_rank_id,
                              line_rank_inner_id, past_key_values_length=0):
    """Forward pass of LayoutRobertaEmbeddings (eval mode)."""
    B, S = input_ids.shape
    N = B * S

    # id bookkeeping (matches create_position_ids_from_input_ids)
    mask = (input_ids != PAD_TOKEN_ID).astype(jnp.int32)
    position_ids = (jnp.cumsum(mask, axis=1) + past_key_values_length) * mask + PAD_TOKEN_ID
    token_type_ids = jnp.zeros_like(input_ids)

    bbox = line_bbox.astype(jnp.int32)
    # Pack all 11 segment-local lookup ids into ONE (N, 11) int32 array (one DMA
    # per token tile).
    ids = jnp.stack([
        input_ids,                              # seg0: word
        position_ids + POS_ROW_OFF,             # seg0: absolute position
        token_type_ids,                         # seg1: token type
        line_rank_id + LR_ROW_OFF,              # seg1: line rank
        line_rank_inner_id + LRI_ROW_OFF,       # seg1: line rank inner
        bbox[..., 0],                           # seg2: left x
        bbox[..., 1],                           # seg3: upper y
        bbox[..., 2],                           # seg4: right x
        bbox[..., 3],                           # seg5: lower y
        bbox[..., 3] - bbox[..., 1],            # seg6: height
        bbox[..., 2] - bbox[..., 0],            # seg7: width
    ], axis=-1).reshape(N, NUM_ID_COLS).astype(jnp.int32)

    n_tiles = pl.cdiv(N, TOKEN_TILE)
    n_pad = n_tiles * TOKEN_TILE
    if n_pad != N:
        ids = jnp.pad(ids, ((0, n_pad - N), (0, 0)))   # pad tokens use valid id 0

    out = pl.pallas_call(
        functools.partial(embeddings_kernel, eps=LAYER_NORM_EPS, hidden=HIDDEN),
        out_shape=jax.ShapeDtypeStruct((n_pad, HIDDEN), jnp.float32),
        grid=(n_tiles,),
        in_specs=[
            # ids streamed per token tile
            pl.BlockSpec((TOKEN_TILE, NUM_ID_COLS), lambda i: (i, 0)),
            # fused table + gamma/beta: constant block index -> DMA'd once,
            # VMEM-resident across the token grid
            pl.BlockSpec((NUM_SEGS * SEG_ROWS, HIDDEN), lambda i: (0, 0)),
            pl.BlockSpec((2, HIDDEN), lambda i: (0, 0)),
        ],
        out_specs=pl.BlockSpec((TOKEN_TILE, HIDDEN), lambda i: (i, 0)),
        compiler_params=pltpu.CompilerParams(
            dimension_semantics=("parallel",)),   # shards across v7x's 2 TCs
    )(ids, prepared["table"], prepared["gamma_beta"])

    return out[:N].reshape(B, S, HIDDEN)


# --------------------------- pure-JAX reference --------------------------------
def reference(params, input_ids, line_bbox, line_rank_id, line_rank_inner_id):
    mask = (input_ids != PAD_TOKEN_ID).astype(jnp.int32)
    position_ids = jnp.cumsum(mask, axis=1) * mask + PAD_TOKEN_ID
    token_type_ids = jnp.zeros_like(input_ids)

    emb = params["word"][input_ids]
    emb = emb + params["tok"][token_type_ids]
    emb = emb + params["pos"][position_ids]
    b0, b1, b2, b3 = (line_bbox[..., i] for i in range(4))
    spatial = jnp.concatenate(
        [params["x_pos"][b0], params["y_pos"][b1], params["x_pos"][b2],
         params["y_pos"][b3], params["h_pos"][b3 - b1], params["w_pos"][b2 - b0]],
        axis=-1)
    emb = emb + spatial
    emb = emb + params["line_rank"][line_rank_id]
    emb = emb + params["line_rank_inner"][line_rank_inner_id]
    mean = jnp.mean(emb, axis=-1, keepdims=True)
    var = jnp.mean((emb - mean) ** 2, axis=-1, keepdims=True)
    return (emb - mean) / jnp.sqrt(var + LAYER_NORM_EPS) * params["ln_gamma"] + params["ln_beta"]


# ----------------------------------- main --------------------------------------
if __name__ == "__main__":
    key = jax.random.PRNGKey(0)
    keys = jax.random.split(key, 16)

    def init(k, shape, scale=0.02):
        return (scale * jax.random.normal(k, shape)).astype(jnp.float32)

    params = {
        "word": init(keys[0], (VOCAB_SIZE, HIDDEN)),
        "pos": init(keys[1], (MAX_POS, HIDDEN)),
        "tok": init(keys[2], (TYPE_VOCAB, HIDDEN)),
        "line_rank": init(keys[3], (MAX_POS, HIDDEN)),
        "line_rank_inner": init(keys[4], (4, HIDDEN)),
        "x_pos": init(keys[5], (MAX_2D_POS, COORD_SIZE)),
        "y_pos": init(keys[6], (MAX_2D_POS, COORD_SIZE)),
        "h_pos": init(keys[7], (MAX_2D_POS, SHAPE_SIZE)),
        "w_pos": init(keys[8], (MAX_2D_POS, SHAPE_SIZE)),
        "ln_gamma": (1.0 + 0.1 * jax.random.normal(keys[9], (HIDDEN,))).astype(jnp.float32),
        "ln_beta": init(keys[10], (HIDDEN,), scale=0.1),
    }
    # zero the padding row of word/pos embeddings (nn.Embedding padding_idx)
    params["word"] = params["word"].at[PAD_TOKEN_ID].set(0.0)
    params["pos"] = params["pos"].at[PAD_TOKEN_ID].set(0.0)

    # one-time parameter preprocessing (fused (1024, 32) table, packed gamma/beta)
    prepared = prepare_params(params)

    input_ids = jax.random.randint(keys[11], (BATCH, SEQ), 0, VOCAB_SIZE, dtype=jnp.int32)
    input_ids = input_ids.at[0, -2:].set(PAD_TOKEN_ID)  # some padding tokens

    x1 = jax.random.randint(keys[12], (BATCH, SEQ), 0, 60, dtype=jnp.int32)
    y1 = jax.random.randint(keys[13], (BATCH, SEQ), 0, 60, dtype=jnp.int32)
    wdt = jax.random.randint(keys[14], (BATCH, SEQ), 0, 60, dtype=jnp.int32)
    hgt = jax.random.randint(keys[15], (BATCH, SEQ), 0, 60, dtype=jnp.int32)
    line_bbox = jnp.stack([x1, y1, x1 + wdt, y1 + hgt], axis=-1)  # (B, S, 4)

    line_rank_id = jax.random.randint(keys[11], (BATCH, SEQ), 0, MAX_POS, dtype=jnp.int32)
    line_rank_inner_id = jax.random.randint(keys[12], (BATCH, SEQ), 0, 4, dtype=jnp.int32)

    out = layout_roberta_embeddings(prepared, input_ids, line_bbox,
                                    line_rank_id, line_rank_inner_id)
    out = jax.block_until_ready(out)

    ref = reference(params, input_ids, line_bbox, line_rank_id, line_rank_inner_id)
    assert out.shape == (BATCH, SEQ, HIDDEN)
    assert jnp.allclose(out, ref, rtol=1e-4, atol=1e-4), "mismatch vs JAX reference"

    print("KERNEL_OK")
</pallas_src>

<mosaic_0001>
module attributes {stable_mosaic.version = 11 : i64} {
  func.func @embeddings_kernel(%arg0: i32, %arg1: memref<8x11xi32, #tpu.memory_space<vmem>>, %arg2: memref<1024x32xf32, #tpu.memory_space<vmem>>, %arg3: memref<2x32xf32, #tpu.memory_space<vmem>>, %arg4: memref<8x32xf32, #tpu.memory_space<vmem>>) attributes {dimension_semantics = [#tpu.dimension_semantics<parallel>], iteration_bounds = array<i64: 2>, scalar_prefetch = 0 : i64, scratch_operands = 0 : i64, tpu.core_type = #tpu.core_type<tc>, window_params = [{transform_indices = @transform_0, window_bounds = array<i64: 8, 11>}, {pipeline_mode = #tpu.pipeline_mode<synchronous>, transform_indices = @transform_1, window_bounds = array<i64: 1024, 32>}, {pipeline_mode = #tpu.pipeline_mode<synchronous>, transform_indices = @transform_2, window_bounds = array<i64: 2, 32>}, {transform_indices = @transform_3, window_bounds = array<i64: 8, 32>}]} {
    %c0 = arith.constant 0 : index
    %c0_0 = arith.constant 0 : index
    %0 = vector.load %arg1[%c0, %c0_0] : memref<8x11xi32, #tpu.memory_space<vmem>>, vector<8x11xi32>
    %1 = tpu.iota {dimensions = array<i32: 1>} : vector<8x128xi32>
    %2 = vector.extract_strided_slice %0 {offsets = [0, 0], sizes = [8, 1], strides = [1, 1]} : vector<8x11xi32> to vector<8x1xi32>
    %3 = vector.broadcast %2 : vector<8x1xi32> to vector<8x128xi32>
    %4 = arith.cmpi eq, %1, %3 : vector<8x128xi32>
    %5 = arith.extui %4 : vector<8x128xi1> to vector<8x128xi32>
    %6 = arith.sitofp %5 : vector<8x128xi32> to vector<8x128xf32>
    %7 = vector.extract_strided_slice %0 {offsets = [0, 1], sizes = [8, 1], strides = [1, 1]} : vector<8x11xi32> to vector<8x1xi32>
    %8 = vector.broadcast %7 : vector<8x1xi32> to vector<8x128xi32>
    %9 = arith.cmpi eq, %1, %8 : vector<8x128xi32>
    %10 = arith.extui %9 : vector<8x128xi1> to vector<8x128xi32>
    %11 = arith.sitofp %10 : vector<8x128xi32> to vector<8x128xf32>
    %12 = arith.addf %6, %11 : vector<8x128xf32>
    %13 = vector.extract_strided_slice %0 {offsets = [0, 2], sizes = [8, 1], strides = [1, 1]} : vector<8x11xi32> to vector<8x1xi32>
    %14 = vector.broadcast %13 : vector<8x1xi32> to vector<8x128xi32>
    %15 = arith.cmpi eq, %1, %14 : vector<8x128xi32>
    %16 = arith.extui %15 : vector<8x128xi1> to vector<8x128xi32>
    %17 = arith.sitofp %16 : vector<8x128xi32> to vector<8x128xf32>
    %18 = vector.extract_strided_slice %0 {offsets = [0, 3], sizes = [8, 1], strides = [1, 1]} : vector<8x11xi32> to vector<8x1xi32>
    %19 = vector.broadcast %18 : vector<8x1xi32> to vector<8x128xi32>
    %20 = arith.cmpi eq, %1, %19 : vector<8x128xi32>
    %21 = arith.extui %20 : vector<8x128xi1> to vector<8x128xi32>
    %22 = arith.sitofp %21 : vector<8x128xi32> to vector<8x128xf32>
    %23 = arith.addf %17, %22 : vector<8x128xf32>
    %24 = vector.extract_strided_slice %0 {offsets = [0, 4], sizes = [8, 1], strides = [1, 1]} : vector<8x11xi32> to vector<8x1xi32>
    %25 = vector.broadcast %24 : vector<8x1xi32> to vector<8x128xi32>
    %26 = arith.cmpi eq, %1, %25 : vector<8x128xi32>
    %27 = arith.extui %26 : vector<8x128xi1> to vector<8x128xi32>
    %28 = arith.sitofp %27 : vector<8x128xi32> to vector<8x128xf32>
    %29 = arith.addf %23, %28 : vector<8x128xf32>
    %30 = vector.extract_strided_slice %0 {offsets = [0, 5], sizes = [8, 1], strides = [1, 1]} : vector<8x11xi32> to vector<8x1xi32>
    %31 = vector.broadcast %30 : vector<8x1xi32> to vector<8x128xi32>
    %32 = arith.cmpi eq, %1, %31 : vector<8x128xi32>
    %33 = arith.extui %32 : vector<8x128xi1> to vector<8x128xi32>
    %34 = arith.sitofp %33 : vector<8x128xi32> to vector<8x128xf32>
    %35 = vector.extract_strided_slice %0 {offsets = [0, 6], sizes = [8, 1], strides = [1, 1]} : vector<8x11xi32> to vector<8x1xi32>
    %36 = vector.broadcast %35 : vector<8x1xi32> to vector<8x128xi32>
    %37 = arith.cmpi eq, %1, %36 : vector<8x128xi32>
    %38 = arith.extui %37 : vector<8x128xi1> to vector<8x128xi32>
    %39 = arith.sitofp %38 : vector<8x128xi32> to vector<8x128xf32>
    %40 = vector.extract_strided_slice %0 {offsets = [0, 7], sizes = [8, 1], strides = [1, 1]} : vector<8x11xi32> to vector<8x1xi32>
    %41 = vector.broadcast %40 : vector<8x1xi32> to vector<8x128xi32>
    %42 = arith.cmpi eq, %1, %41 : vector<8x128xi32>
    %43 = arith.extui %42 : vector<8x128xi1> to vector<8x128xi32>
    %44 = arith.sitofp %43 : vector<8x128xi32> to vector<8x128xf32>
    %45 = vector.extract_strided_slice %0 {offsets = [0, 8], sizes = [8, 1], strides = [1, 1]} : vector<8x11xi32> to vector<8x1xi32>
    %46 = vector.broadcast %45 : vector<8x1xi32> to vector<8x128xi32>
    %47 = arith.cmpi eq, %1, %46 : vector<8x128xi32>
    %48 = arith.extui %47 : vector<8x128xi1> to vector<8x128xi32>
    %49 = arith.sitofp %48 : vector<8x128xi32> to vector<8x128xf32>
    %50 = vector.extract_strided_slice %0 {offsets = [0, 9], sizes = [8, 1], strides = [1, 1]} : vector<8x11xi32> to vector<8x1xi32>
    %51 = vector.broadcast %50 : vector<8x1xi32> to vector<8x128xi32>
    %52 = arith.cmpi eq, %1, %51 : vector<8x128xi32>
    %53 = arith.extui %52 : vector<8x128xi1> to vector<8x128xi32>
    %54 = arith.sitofp %53 : vector<8x128xi32> to vector<8x128xf32>
    %55 = vector.extract_strided_slice %0 {offsets = [0, 10], sizes = [8, 1], strides = [1, 1]} : vector<8x11xi32> to vector<8x1xi32>
    %56 = vector.broadcast %55 : vector<8x1xi32> to vector<8x128xi32>
    %57 = arith.cmpi eq, %1, %56 : vector<8x128xi32>
    %58 = arith.extui %57 : vector<8x128xi1> to vector<8x128xi32>
    %59 = arith.sitofp %58 : vector<8x128xi32> to vector<8x128xf32>
    %cst = arith.constant 0.000000e+00 : f32
    %60 = vector.broadcast %cst : f32 to vector<8x32xf32>
    %c0_1 = arith.constant 0 : index
    %c0_2 = arith.constant 0 : index
    %61 = vector.load %arg2[%c0_1, %c0_2] : memref<1024x32xf32, #tpu.memory_space<vmem>>, vector<128x32xf32>
    %cst_3 = arith.constant dense<0.000000e+00> : vector<8x32xf32>
    %62 = tpu.matmul %12, %61, %cst_3 {dimension_numbers = #tpu.dot_dimension_numbers<[1], [0], [0], [1], [0, 0, 1, 1], [], []>} : vector<8x128xf32>, vector<128x32xf32>, vector<8x32xf32> -> vector<8x32xf32>
    %63 = arith.addf %60, %62 : vector<8x32xf32>
    %c128 = arith.constant 128 : index
    %c0_4 = arith.constant 0 : index
    %64 = vector.load %arg2[%c128, %c0_4] : memref<1024x32xf32, #tpu.memory_space<vmem>>, vector<128x32xf32>
    %cst_5 = arith.constant dense<0.000000e+00> : vector<8x32xf32>
    %65 = tpu.matmul %29, %64, %cst_5 {dimension_numbers = #tpu.dot_dimension_numbers<[1], [0], [0], [1], [0, 0, 1, 1], [], []>} : vector<8x128xf32>, vector<128x32xf32>, vector<8x32xf32> -> vector<8x32xf32>
    %66 = arith.addf %63, %65 : vector<8x32xf32>
    %c256 = arith.constant 256 : index
    %c0_6 = arith.constant 0 : index
    %67 = vector.load %arg2[%c256, %c0_6] : memref<1024x32xf32, #tpu.memory_space<vmem>>, vector<128x32xf32>
    %cst_7 = arith.constant dense<0.000000e+00> : vector<8x32xf32>
    %68 = tpu.matmul %34, %67, %cst_7 {dimension_numbers = #tpu.dot_dimension_numbers<[1], [0], [0], [1], [0, 0, 1, 1], [], []>} : vector<8x128xf32>, vector<128x32xf32>, vector<8x32xf32> -> vector<8x32xf32>
    %69 = arith.addf %66, %68 : vector<8x32xf32>
    %c384 = arith.constant 384 : index
    %c0_8 = arith.constant 0 : index
    %70 = vector.load %arg2[%c384, %c0_8] : memref<1024x32xf32, #tpu.memory_space<vmem>>, vector<128x32xf32>
    %cst_9 = arith.constant dense<0.000000e+00> : vector<8x32xf32>
    %71 = tpu.matmul %39, %70, %cst_9 {dimension_numbers = #tpu.dot_dimension_numbers<[1], [0], [0], [1], [0, 0, 1, 1], [], []>} : vector<8x128xf32>, vector<128x32xf32>, vector<8x32xf32> -> vector<8x32xf32>
    %72 = arith.addf %69, %71 : vector<8x32xf32>
    %c512 = arith.constant 512 : index
    %c0_10 = arith.constant 0 : index
    %73 = vector.load %arg2[%c512, %c0_10] : memref<1024x32xf32, #tpu.memory_space<vmem>>, vector<128x32xf32>
    %cst_11 = arith.constant dense<0.000000e+00> : vector<8x32xf32>
    %74 = tpu.matmul %44, %73, %cst_11 {dimension_numbers = #tpu.dot_dimension_numbers<[1], [0], [0], [1], [0, 0, 1, 1], [], []>} : vector<8x128xf32>, vector<128x32xf32>, vector<8x32xf32> -> vector<8x32xf32>
    %75 = arith.addf %72, %74 : vector<8x32xf32>
    %c640 = arith.constant 640 : index
    %c0_12 = arith.constant 0 : index
    %76 = vector.load %arg2[%c640, %c0_12] : memref<1024x32xf32, #tpu.memory_space<vmem>>, vector<128x32xf32>
    %cst_13 = arith.constant dense<0.000000e+00> : vector<8x32xf32>
    %77 = tpu.matmul %49, %76, %cst_13 {dimension_numbers = #tpu.dot_dimension_numbers<[1], [0], [0], [1], [0, 0, 1, 1], [], []>} : vector<8x128xf32>, vector<128x32xf32>, vector<8x32xf32> -> vector<8x32xf32>
    %78 = arith.addf %75, %77 : vector<8x32xf32>
    %c768 = arith.constant 768 : index
    %c0_14 = arith.constant 0 : index
    %79 = vector.load %arg2[%c768, %c0_14] : memref<1024x32xf32, #tpu.memory_space<vmem>>, vector<128x32xf32>
    %cst_15 = arith.constant dense<0.000000e+00> : vector<8x32xf32>
    %80 = tpu.matmul %54, %79, %cst_15 {dimension_numbers = #tpu.dot_dimension_numbers<[1], [0], [0], [1], [0, 0, 1, 1], [], []>} : vector<8x128xf32>, vector<128x32xf32>, vector<8x32xf32> -> vector<8x32xf32>
    %81 = arith.addf %78, %80 : vector<8x32xf32>
    %c896 = arith.constant 896 : index
    %c0_16 = arith.constant 0 : index
    %82 = vector.load %arg2[%c896, %c0_16] : memref<1024x32xf32, #tpu.memory_space<vmem>>, vector<128x32xf32>
    %cst_17 = arith.constant dense<0.000000e+00> : vector<8x32xf32>
    %83 = tpu.matmul %59, %82, %cst_17 {dimension_numbers = #tpu.dot_dimension_numbers<[1], [0], [0], [1], [0, 0, 1, 1], [], []>} : vector<8x128xf32>, vector<128x32xf32>, vector<8x32xf32> -> vector<8x32xf32>
    %84 = arith.addf %81, %83 : vector<8x32xf32>
    %cst_18 = arith.constant dense<0.000000e+00> : vector<8xf32>
    %85 = vector.multi_reduction <add>, %84, %cst_18 [1] : vector<8x32xf32> to vector<8xf32>
    %86 = vector.shape_cast %85 : vector<8xf32> to vector<8x1xf32>
    %cst_19 = arith.constant 3.200000e+01 : f32
    %87 = vector.broadcast %cst_19 : f32 to vector<8x1xf32>
    %88 = arith.divf %86, %87 : vector<8x1xf32>
    %89 = vector.broadcast %88 : vector<8x1xf32> to vector<8x32xf32>
    %90 = arith.subf %84, %89 : vector<8x32xf32>
    %91 = arith.mulf %90, %90 : vector<8x32xf32>
    %cst_20 = arith.constant dense<0.000000e+00> : vector<8xf32>
    %92 = vector.multi_reduction <add>, %91, %cst_20 [1] : vector<8x32xf32> to vector<8xf32>
    %93 = vector.shape_cast %92 : vector<8xf32> to vector<8x1xf32>
    %cst_21 = arith.constant 3.200000e+01 : f32
    %94 = vector.broadcast %cst_21 : f32 to vector<8x1xf32>
    %95 = arith.divf %93, %94 : vector<8x1xf32>
    %cst_22 = arith.constant 9.99999996E-13 : f32
    %96 = vector.broadcast %cst_22 : f32 to vector<8x1xf32>
    %97 = arith.addf %95, %96 : vector<8x1xf32>
    %98 = math.rsqrt %97 : vector<8x1xf32>
    %99 = vector.broadcast %98 : vector<8x1xf32> to vector<8x32xf32>
    %100 = arith.mulf %90, %99 : vector<8x32xf32>
    %c0_23 = arith.constant 0 : index
    %c0_24 = arith.constant 0 : index
    %101 = vector.load %arg3[%c0_23, %c0_24] : memref<2x32xf32, #tpu.memory_space<vmem>>, vector<1x32xf32>
    %102 = vector.broadcast %101 : vector<1x32xf32> to vector<8x32xf32>
    %103 = arith.mulf %100, %102 : vector<8x32xf32>
    %c1 = arith.constant 1 : index
    %c0_25 = arith.constant 0 : index
    %104 = vector.load %arg3[%c1, %c0_25] : memref<2x32xf32, #tpu.memory_space<vmem>>, vector<1x32xf32>
    %105 = vector.broadcast %104 : vector<1x32xf32> to vector<8x32xf32>
    %106 = arith.addf %103, %105 : vector<8x32xf32>
    %c0_26 = arith.constant 0 : index
    %c0_27 = arith.constant 0 : index
    %107 = vector.load %arg4[%c0_26, %c0_27] : memref<8x32xf32, #tpu.memory_space<vmem>>, vector<8x32xf32>
    tpu.vector_store %arg4[%c0_26, %c0_27], %106 {strides = array<i32>} : memref<8x32xf32, #tpu.memory_space<vmem>>, vector<8x32xf32>,
    return
  }
  func.func @transform_0(%arg0: i32) -> (i32, i32) {
    %c0_i32 = arith.constant 0 : i32
    %c0_i32_0 = arith.constant 0 : i32
    return %arg0, %c0_i32 : i32, i32
  }
  func.func @transform_1(%arg0: i32) -> (i32, i32) {
    %c0_i32 = arith.constant 0 : i32
    %c0_i32_0 = arith.constant 0 : i32
    %c0_i32_1 = arith.constant 0 : i32
    return %c0_i32, %c0_i32_0 : i32, i32
  }
  func.func @transform_2(%arg0: i32) -> (i32, i32) {
    %c0_i32 = arith.constant 0 : i32
    %c0_i32_0 = arith.constant 0 : i32
    %c0_i32_1 = arith.constant 0 : i32
    return %c0_i32, %c0_i32_0 : i32, i32
  }
  func.func @transform_3(%arg0: i32) -> (i32, i32) {
    %c0_i32 = arith.constant 0 : i32
    %c0_i32_0 = arith.constant 0 : i32
    return %arg0, %c0_i32 : i32, i32
  }
}

</mosaic_0001>

<bundles_post_ra>
// kernel: layout_roberta_embeddings.1
= control target key start
LH: loop header
LB: loop body
LE: loop exit
PB: predicated region body
PF: predicated region fallthrough
CT: control target
= control target key end

     0   :  { %8 = vsyncpa [#allocation3], 0  ;;  %s1344_s0 = inlined_call_operand.vmem [shape: s32[16,11], index: 0, kind: input, shape index: {}]   ;;  %s1345_s1 = inlined_call_operand.vmem [shape: f32[1024,32], index: 1, kind: input, shape index: {}]   ;;  %s1346_s2 = inlined_call_operand.vmem [shape: f32[2,32], index: 2, kind: input, shape index: {}]   ;;  %s1347_s3 = inlined_call_operand.hbm [shape: f32[16,32], index: 3, kind: output, shape index: {}]  }
   0x1   :  { %10 = vsyncpa [#allocation3 + $0x1], 0  ;;  %s840_s12 = smov 0   ;;  %s842_s13 = smov 0  }
   0x2   :  { %s844_s14 = smov 0   ;;  %s846_s15 = smov 0  }
   0x3 LB: > { %s861_s16 = sadd.s32 4294967295, %s804_s15   ;;  %s644_s17 = sadd.s32 4294967294, %s804_s15   ;;  %s804_s15 = sphi %s846_s15, %s1353_s15   ;;  %s800_s14 = sphi %s844_s14, %s1352_s14   ;;  %s796_s13 = sphi %s842_s13, %s1351_s13   ;;  %s792_s12 = sphi %s840_s12, %s1350_s12  }
   0x4   : > { %s865_s18 = sadd.s32 1, %s804_s15   ;;  %s91_s19 = sadd.s32 1, %s800_s14 }
   0x5   : > { %s88_s20 = ssub.s32 %s804_s15, %s865_s18  ;;  %p101_p0 = scmp.ne.s32.totalorder %s800_s14, %s796_s13 }
   0x6   : > { %p89_p1 = scmp.eq.s32.totalorder %s88_s20, 0  ;;  %p102_p2 = scmp.eq.s32.totalorder %s861_s16, 1 }
   0x7   : > { %p107_p3 = scmp.ne.s32.totalorder %s796_s13, %s792_s12  ;;  %p108_p4 = scmp.eq.s32.totalorder %s644_s17, 1 }
   0x8   : > { %s876_s21 = scalar_select %p89_p1, %s800_s14, %s91_s19  }
   0x9   : > { %p878_p5 = por %p102_p2, %p101_p0  ;;  %p882_p6 = por %p108_p4, %p107_p3 }
   0xa   : > { %p647_p7 = scmp.ge.s32.totalorder %s804_s15, 1  ;;  %p139_p8 = scmp.lt.s32.totalorder %s804_s15, 3 }
   0xc   : > { %p140_p9 = pnand %p647_p7, %p139_p8 }
   0xd   : > { %p162_p10 = scmp.lt.s32.totalorder (!%p140_p9), %s861_s16, 1  ;;  %s159_s6 = sand.u32 (!%p140_p9), 1, %s796_s13  }
   0xe   : > { %143 = sbr.rel (%p140_p9) target bundleno = 572 (0x23c), region = 32  ;;  %s648_s7 = sshll.u32 (!%p140_p9), %s159_s6, 3 }
   0xf   : > { %s668_s8 = sshll.u32 (!%p140_p9), %s861_s16, 3  ;;  %s570_s27 = scalar_lea.sflag (!%p140_p9), [#allocation3], %s159_s6 }
  0x10   : > { %s580_s19 = scalar_lea.hbm (!%p140_p9), %s1347_s3, %s668_s8  ;;  %s762_s5 = scalar_lea.hbm (!%p140_p9), %s1347_s3, 16 }
  0x11   : > { %s584_s26 = sshll.u32 (!%p140_p9), %s580_s19, 4  ;;  %s585_s26 = int_to_ptr.hbm [resolvable:$true] %s584_s26 }
  0x12   : > { %s756_s28 = sshra.s32 (!%p140_p9), %s585_s26, 4  ;;  %s757_s28 = int_to_ptr.hbm [resolvable:$true] %s756_s28 }
  0x13   : > { %v806_v0 = vmov 4   ;;  %v807_v1 = vmov 2   ;;  %s163_s24 = scalar_select %p162_p10, %s861_s16, 1  ;;  %v808_v2 = vmov 0   ;;  %v325_v3 = vld [vmem:[%s1345_s1 + $0x178] sm:$0xff]  ;;  %v324_v4 = vld [vmem:[%s1345_s1 + $0x170] sm:$0xff] }
  0x14   : > { %726 = vset.pattern.permute.xlu1 %v806_v0  ;;  %724 = vset.pattern.permute.xlu0 %v807_v1  ;;  %v269_v5 = vld [vmem:[%s1345_s1 + $0xf8] sm:$0xff]  ;;  %v268_v8 = vld [vmem:[%s1345_s1 + $0xf0] sm:$0xff]  ;;  %v323_v10 = vld [vmem:[%s1345_s1 + $0x168] sm:$0xff]  ;;  %v809_v21 = vmov 5   ;;  %v810_v22 = vmov 3   ;;  %v811_v26 = vmov 1   ;;  %p763_p0 = scmp.lt.s32.totalorder %s757_s28, %s1347_s3 }
  0x15   : > { %728 = vset.pattern.permute.xlu2 %v808_v2  ;;  %s649_s25 = sshll.u32 %s163_s24, 3  ;;  %326 = vmatpush.msra.mxu2 %v325_v3  ;;  %v362_v6 = vld [vmem:[%s1345_s1 + $0x1f8] sm:$0xff]  ;;  %v361_v11 = vld [vmem:[%s1345_s1 + $0x1f0] sm:$0xff]  ;;  %v267_v12 = vld [vmem:[%s1345_s1 + $0xe8] sm:$0xff]  ;;  %v812_v36 = vmov 6   ;;  %v813_v37 = vmov 7  }
  0x16   : > { %s165_s30 = scalar_lea.vmem %s1344_s0, %s649_s25  ;;  %270 = vmatpush.msra.mxu0 %v269_v5  ;;  %363 = vmatpush.msra.mxu3 %v362_v6  ;;  %v253_v9 = vld [vmem:[%s1345_s1 + $0x78] sm:$0xff]  ;;  %v252_v13 = vld [vmem:[%s1345_s1 + $0x70] sm:$0xff]  ;;  %v322_v14 = vld [vmem:[%s1345_s1 + $0x160] sm:$0xff]  ;;  %v814_v41 = vmov 9   ;;  %v815_v53 = vmov 10   ;;  %v816_v57 = vmov 8  }
  0x17   : > { %v905_v7 = vld [vmem:[%s165_s30] sm:$0xff]  ;;  %327 = vmatpush.msra.mxu2 %v324_v4  ;;  %290 = vmatpush.msra.mxu1 %v253_v9  ;;  %v360_v15 = vld [vmem:[%s1345_s1 + $0x1e8] sm:$0xff]  ;;  %v321_v18 = vld [vmem:[%s1345_s1 + $0x158] sm:$0xff]  ;;  %vm532_vm11 = vcmask 261120   ;;  %s161_s25 = scalar_lea.vmem [#allocation2], %s648_s7  ;;  %s758_s29 = scalar_lea.hbm %s757_s28, 8 }
  0x18   : > { %196 = vperm.xlu1 %726, %v905_v7   ;;  %183 = vperm.xlu0 %724, %v905_v7   ;;  %v266_v16 = vld [vmem:[%s1345_s1 + $0xe0] sm:$0xff]  ;;  %v251_v17 = vld [vmem:[%s1345_s1 + $0x68] sm:$0xff]  ;;  %v320_v20 = vld [vmem:[%s1345_s1 + $0x150] sm:$0xff]  ;;  %s582_s16 = sshll.u32 %s161_s25, 4  ;;  %p759_p11 = scmp.ne.s32.totalorder %s757_s28, %s758_s29  ;;  %s583_s16 = int_to_ptr.vmem [resolvable:$true] %s582_s16 }
  0x19   : > { %170 = vperm.xlu2 %728, %v905_v7   ;;  %271 = vmatpush.msra.mxu0 %v268_v8  ;;  %v359_v19 = vld [vmem:[%s1345_s1 + $0x1e0] sm:$0xff]  ;;  %v265_v23 = vld [vmem:[%s1345_s1 + $0xd8] sm:$0xff]  ;;  %v319_v24 = vld [vmem:[%s1345_s1 + $0x148] sm:$0xff]  ;;  %p764_p1 = scmp.lt.s32.totalorder %s762_s5, %s758_s29 }
  0x1a   : > { %328 = vmatpush.msra.mxu2 %v323_v10  ;;  %364 = vmatpush.msra.mxu3 %v361_v11  ;;  %v250_v25 = vld [vmem:[%s1345_s1 + $0x60] sm:$0xff]  ;;  %v358_v27 = vld [vmem:[%s1345_s1 + $0x1d8] sm:$0xff]  ;;  %v264_v28 = vld [vmem:[%s1345_s1 + $0xd0] sm:$0xff]  ;;  %p760_p12 = pnand %p759_p11, %p878_p5 }
  0x1b   : > { %272 = vmatpush.msra.mxu0 %v267_v12  ;;  %291 = vmatpush.msra.mxu1 %v252_v13  ;;  %v318_v29 = vld [vmem:[%s1345_s1 + $0x140] sm:$0xff]  ;;  %v249_v30 = vld [vmem:[%s1345_s1 + $0x58] sm:$0xff]  ;;  %v357_v31 = vld [vmem:[%s1345_s1 + $0x1d0] sm:$0xff]  ;;  %p765_p2 = por %p764_p1, %p763_p0 }
  0x1c   : > { %329 = vmatpush.msra.mxu2 %v322_v14  ;;  %365 = vmatpush.msra.mxu3 %v360_v15  ;;  %v263_v32 = vld [vmem:[%s1345_s1 + $0xc8] sm:$0xff]  ;;  %v317_v33 = vld [vmem:[%s1345_s1 + $0x138] sm:$0xff]  ;;  %v248_v34 = vld [vmem:[%s1345_s1 + $0x50] sm:$0xff]  ;;  %p761_p13 = pneg %p760_p12 }
  0x1d   : > { %273 = vmatpush.msra.mxu0 %v266_v16  ;;  %292 = vmatpush.msra.mxu1 %v251_v17  ;;  %v316_v35 = vld [vmem:[%s1345_s1 + $0x130] sm:$0xff]  ;;  %v356_v38 = vld [vmem:[%s1345_s1 + $0x1c8] sm:$0xff]  ;;  %v262_v39 = vld [vmem:[%s1345_s1 + $0xc0] sm:$0xff] }
  0x1e   : > { %330 = vmatpush.msra.mxu2 %v321_v18  ;;  %366 = vmatpush.msra.mxu3 %v359_v19  ;;  %v247_v40 = vld [vmem:[%s1345_s1 + $0x48] sm:$0xff]  ;;  %v355_v43 = vld [vmem:[%s1345_s1 + $0x1c0] sm:$0xff]  ;;  %v261_v44 = vld [vmem:[%s1345_s1 + $0xb8] sm:$0xff]  ;;  %p766_p3 = pnand %p765_p2, %p761_p13 }
  0x1f   : > { %274 = vmatpush.msra.mxu0 %v265_v23  ;;  %293 = vmatpush.msra.mxu1 %v250_v25  ;;  %v315_v42 = vld [vmem:[%s1345_s1 + $0x128] sm:$0xff]  ;;  %v246_v45 = vld [vmem:[%s1345_s1 + $0x40] sm:$0xff]  ;;  %v354_v47 = vld [vmem:[%s1345_s1 + $0x1b8] sm:$0xff] }
  0x20   : > { %727 = vset.pattern.permute.xlu1 %v809_v21  ;;  %725 = vset.pattern.permute.xlu0 %v810_v22  ;;  %v314_v46 = vld [vmem:[%s1345_s1 + $0x120] sm:$0xff]  ;;  %v260_v48 = vld [vmem:[%s1345_s1 + $0xb0] sm:$0xff]  ;;  %v245_v49 = vld [vmem:[%s1345_s1 + $0x38] sm:$0xff] }
  0x21   : > { %203 = vperm.xlu1 %727, %v905_v7   ;;  %189 = vperm.xlu0 %725, %v905_v7   ;;  %v313_v50 = vld [vmem:[%s1345_s1 + $0x118] sm:$0xff]  ;;  %v353_v51 = vld [vmem:[%s1345_s1 + $0x1b0] sm:$0xff]  ;;  %v259_v52 = vld [vmem:[%s1345_s1 + $0xa8] sm:$0xff] }
  0x22   : > { %729 = vset.pattern.permute.xlu2 %v811_v26  ;;  %331 = vmatpush.msra.mxu2 %v320_v20  ;;  %v244_v54 = vld [vmem:[%s1345_s1 + $0x30] sm:$0xff]  ;;  %v352_v56 = vld [vmem:[%s1345_s1 + $0x1a8] sm:$0xff]  ;;  %v258_v58 = vld [vmem:[%s1345_s1 + $0xa0] sm:$0xff] }
  0x23   : > { %176 = vperm.xlu2 %729, %v905_v7   ;;  %367 = vmatpush.msra.mxu3 %v358_v27  ;;  %v312_v55 = vld [vmem:[%s1345_s1 + $0x110] sm:$0xff]  ;;  %v243_v59 = vld [vmem:[%s1345_s1 + $0x28] sm:$0xff]  ;;  %v351_v61 = vld [vmem:[%s1345_s1 + $0x1a0] sm:$0xff] }
  0x24   : > { %332 = vmatpush.msra.mxu2 %v319_v24  ;;  %275 = vmatpush.msra.mxu0 %v264_v28  ;;  %v311_v60 = vld [vmem:[%s1345_s1 + $0x108] sm:$0xff]  ;;  %v257_v62 = vld [vmem:[%s1345_s1 + $0x98] sm:$0xff]  ;;  %v242_v63 = vld [vmem:[%s1345_s1 + $0x20] sm:$0xff] }
  0x25   : > { %294 = vmatpush.msra.mxu1 %v249_v30  ;;  %368 = vmatpush.msra.mxu3 %v357_v31  ;;  %v310_v0 = vld [vmem:[%s1345_s1 + $0x100] sm:$0xff]  ;;  %v350_v1 = vld [vmem:[%s1345_s1 + $0x198] sm:$0xff]  ;;  %v256_v3 = vld [vmem:[%s1345_s1 + $0x90] sm:$0xff] }
  0x26   : > { %333 = vmatpush.msra.mxu2 %v318_v29  ;;  %276 = vmatpush.msra.mxu0 %v263_v32  ;;  %v473_v2 = vld [vmem:[%s1345_s1 + $0x378] sm:$0xff]  ;;  %v349_v5 = vld [vmem:[%s1345_s1 + $0x190] sm:$0xff]  ;;  %v348_v9 = vld [vmem:[%s1345_s1 + $0x188] sm:$0xff] }
  0x27   : > { %295 = vmatpush.msra.mxu1 %v248_v34  ;;  %369 = vmatpush.msra.mxu3 %v356_v38  ;;  %v241_v4 = vld [vmem:[%s1345_s1 + $0x18] sm:$0xff]  ;;  %v472_v6 = vld [vmem:[%s1345_s1 + $0x370] sm:$0xff]  ;;  %v471_v10 = vld [vmem:[%s1345_s1 + $0x368] sm:$0xff] }
  0x28   : > { %334 = vmatpush.msra.mxu2 %v317_v33  ;;  %277 = vmatpush.msra.mxu0 %v262_v39  ;;  %v240_v8 = vld [vmem:[%s1345_s1 + $0x10] sm:$0xff]  ;;  %v254_v11 = vld [vmem:[%s1345_s1 + $0x80] sm:$0xff]  ;;  %v239_v12 = vld [vmem:[%s1345_s1 + $0x8] sm:$0xff] }
  0x29   : > { %730 = vset.pattern.permute.xlu1 %v812_v36  ;;  %732 = vset.pattern.permute.xlu0 %v813_v37  ;;  %v347_v13 = vld [vmem:[%s1345_s1 + $0x180] sm:$0xff]  ;;  %v399_v14 = vld [vmem:[%s1345_s1 + $0x278] sm:$0xff]  ;;  %v398_v18 = vld [vmem:[%s1345_s1 + $0x270] sm:$0xff] }
  0x2a   : > { %209 = vperm.xlu1 %730, %v905_v7   ;;  %215 = vperm.xlu0 %732, %v905_v7   ;;  %v470_v15 = vld [vmem:[%s1345_s1 + $0x360] sm:$0xff]  ;;  %v510_v17 = vld [vmem:[%s1345_s1 + $0x3f8] sm:$0xff]  ;;  %v509_v21 = vld [vmem:[%s1345_s1 + $0x3f0] sm:$0xff] }
  0x2b   : > { %731 = vset.pattern.permute.xlu2 %v814_v41  ;;  %335 = vmatpush.msra.mxu2 %v316_v35  ;;  %v238_v16 = vld [vmem:[%s1345_s1] sm:$0xff]  ;;  %v436_v19 = vld [vmem:[%s1345_s1 + $0x2f8] sm:$0xff]  ;;  %v397_v22 = vld [vmem:[%s1345_s1 + $0x268] sm:$0xff] }
  0x2c   : > { %227 = vperm.xlu2 %731, %v905_v7   ;;  %296 = vmatpush.msra.mxu1 %v247_v40  ;;  %v469_v20 = vld [vmem:[%s1345_s1 + $0x358] sm:$0xff]  ;;  %v435_v23 = vld [vmem:[%s1345_s1 + $0x2f0] sm:$0xff]  ;;  %v508_v25 = vld [vmem:[%s1345_s1 + $0x3e8] sm:$0xff] }
  0x2d   : > { %336 = vmatpush.msra.mxu2 %v315_v42  ;;  %370 = vmatpush.msra.mxu3 %v355_v43  ;;  %v468_v24 = vld [vmem:[%s1345_s1 + $0x350] sm:$0xff]  ;;  %v396_v26 = vld [vmem:[%s1345_s1 + $0x260] sm:$0xff]  ;;  %v434_v27 = vld [vmem:[%s1345_s1 + $0x2e8] sm:$0xff]  ;;  %v167_v43 = vlaneseq }
  0x2e   : > { %278 = vmatpush.msra.mxu0 %v261_v44  ;;  %297 = vmatpush.msra.mxu1 %v246_v45  ;;  %v467_v28 = vld [vmem:[%s1345_s1 + $0x348] sm:$0xff]  ;;  %v507_v29 = vld [vmem:[%s1345_s1 + $0x3e0] sm:$0xff]  ;;  %v395_v30 = vld [vmem:[%s1345_s1 + $0x258] sm:$0xff] }
  0x2f   : > { %337 = vmatpush.msra.mxu2 %v314_v46  ;;  %371 = vmatpush.msra.mxu3 %v354_v47  ;;  %v433_v31 = vld [vmem:[%s1345_s1 + $0x2e0] sm:$0xff]  ;;  %v506_v33 = vld [vmem:[%s1345_s1 + $0x3d8] sm:$0xff]  ;;  %v394_v34 = vld [vmem:[%s1345_s1 + $0x250] sm:$0xff] }
  0x30   : > { %279 = vmatpush.msra.mxu0 %v260_v48  ;;  %298 = vmatpush.msra.mxu1 %v245_v49  ;;  %v466_v32 = vld [vmem:[%s1345_s1 + $0x340] sm:$0xff]  ;;  %v432_v35 = vld [vmem:[%s1345_s1 + $0x2d8] sm:$0xff]  ;;  %v505_v37 = vld [vmem:[%s1345_s1 + $0x3d0] sm:$0xff] }
  0x31   : > { %338 = vmatpush.msra.mxu2 %v313_v50  ;;  %372 = vmatpush.msra.mxu3 %v353_v51  ;;  %v465_v36 = vld [vmem:[%s1345_s1 + $0x338] sm:$0xff]  ;;  %v393_v38 = vld [vmem:[%s1345_s1 + $0x248] sm:$0xff]  ;;  %v431_v39 = vld [vmem:[%s1345_s1 + $0x2d0] sm:$0xff] }
  0x32   : > { %733 = vset.pattern.permute.xlu1 %v815_v53  ;;  %280 = vmatpush.msra.mxu0 %v259_v52  ;;  %v464_v40 = vld [vmem:[%s1345_s1 + $0x330] sm:$0xff]  ;;  %v504_v42 = vld [vmem:[%s1345_s1 + $0x3c8] sm:$0xff]  ;;  %v392_v44 = vld [vmem:[%s1345_s1 + $0x240] sm:$0xff] }
  0x33   : > { %233 = vperm.xlu1 %733, %v905_v7   ;;  %299 = vmatpush.msra.mxu1 %v244_v54  ;;  %v430_v45 = vld [vmem:[%s1345_s1 + $0x2c8] sm:$0xff]  ;;  %v503_v47 = vld [vmem:[%s1345_s1 + $0x3c0] sm:$0xff]  ;;  %v391_v48 = vld [vmem:[%s1345_s1 + $0x238] sm:$0xff]  ;;  %v1218_v54 = vand.u32 127, %v167_v43 }
  0x34   : > { %734 = vset.pattern.permute.xlu2 %v816_v57  ;;  %339 = vmatpush.msra.mxu2 %v312_v55  ;;  %v463_v46 = vld [vmem:[%s1345_s1 + $0x328] sm:$0xff]  ;;  %v429_v49 = vld [vmem:[%s1345_s1 + $0x2c0] sm:$0xff]  ;;  %v502_v51 = vld [vmem:[%s1345_s1 + $0x3b8] sm:$0xff] }
  0x35   : > { %221 = vperm.xlu2 %734, %v905_v7   ;;  %373 = vmatpush.msra.mxu3 %v352_v56  ;;  %v255_v7 = vld [vmem:[%s1345_s1 + $0x88] sm:$0xff]  ;;  %v462_v50 = vld [vmem:[%s1345_s1 + $0x320] sm:$0xff]  ;;  %v390_v52 = vld [vmem:[%s1345_s1 + $0x230] sm:$0xff] }
  0x36   : > { %281 = vmatpush.msra.mxu0 %v258_v58  ;;  %300 = vmatpush.msra.mxu1 %v243_v59  ;;  %v461_v55 = vld [vmem:[%s1345_s1 + $0x318] sm:$0xff]  ;;  %v501_v56 = vld [vmem:[%s1345_s1 + $0x3b0] sm:$0xff]  ;;  %v389_v57 = vld [vmem:[%s1345_s1 + $0x228] sm:$0xff] }
  0x37   : > { %340 = vmatpush.msra.mxu2 %v311_v60  ;;  %374 = vmatpush.msra.mxu3 %v351_v61  ;;  %v427_v58 = vld [vmem:[%s1345_s1 + $0x2b0] sm:$0xff]  ;;  %v500_v60 = vld [vmem:[%s1345_s1 + $0x3a8] sm:$0xff]  ;;  %v388_v61 = vld [vmem:[%s1345_s1 + $0x220] sm:$0xff] }
  0x38   : > { %282 = vmatpush.msra.mxu0 %v257_v62  ;;  %301 = vmatpush.msra.mxu1 %v242_v63  ;;  %v460_v59 = vld [vmem:[%s1345_s1 + $0x310] sm:$0xff]  ;;  %v426_v62 = vld [vmem:[%s1345_s1 + $0x2a8] sm:$0xff] }
  0x39   : > { %341 = vmatpush.msra.mxu2 %v310_v0  ;;  %375 = vmatpush.msra.mxu3 %v350_v1  ;;  %v459_v63 = vld [vmem:[%s1345_s1 + $0x308] sm:$0xff]  ;;  %v817_v0 = vmov 0.0  }
  0x3a   : > { %283 = vmatpush.msra.mxu0 %v256_v3  ;;  %302 = vmatpush.msra.mxu1 %v241_v4  ;;  %v499_v3 = vld [vmem:[%s1345_s1 + $0x3a0] sm:$0xff]  ;;  %v387_v4 = vld [vmem:[%s1345_s1 + $0x218] sm:$0xff] }
  0x3b   : > { %474 = vmatpush.msrb.mxu2 %v473_v2  ;;  %376 = vmatpush.msra.mxu3 %v349_v5  ;;  %v425_v5 = vld [vmem:[%s1345_s1 + $0x2a0] sm:$0xff] }
  0x3c   : > { %284 = vmatpush.msra.mxu0 %v255_v7  ;;  %303 = vmatpush.msra.mxu1 %v240_v8  ;;  %v498_v8 = vld [vmem:[%s1345_s1 + $0x398] sm:$0xff] }
  0x3d   : > { %475 = vmatpush.msrb.mxu2 %v472_v6  ;;  %735 = vset.pattern.permute.xlu0 %v815_v53  ;;  %v428_v53 = vld [vmem:[%s1345_s1 + $0x2b8] sm:$0xff]  ;;  %v458_v6 = vld [vmem:[%s1345_s1 + $0x300] sm:$0xff] }
  0x3e   : > { %377 = vmatpush.msra.mxu3 %v348_v9  ;;  %285 = vmatpush.msra.mxu0 %v254_v11  ;;  %v386_v9 = vld [vmem:[%s1345_s1 + $0x210] sm:$0xff] }
  0x3f   : > { %476 = vmatpush.msrb.mxu2 %v471_v10  ;;  %304 = vmatpush.msra.mxu1 %v239_v12  ;;  %v424_v10 = vld [vmem:[%s1345_s1 + $0x298] sm:$0xff]  ;;  %v497_v12 = vld [vmem:[%s1345_s1 + $0x390] sm:$0xff] }
  0x40   : > { %378 = vmatpush.msra.mxu3 %v347_v13  ;;  %400 = vmatpush.msrb.mxu0 %v399_v14  ;;  %v385_v13 = vld [vmem:[%s1345_s1 + $0x208] sm:$0xff]  ;;  %v423_v14 = vld [vmem:[%s1345_s1 + $0x290] sm:$0xff] }
  0x41   : > { %477 = vmatpush.msrb.mxu2 %v470_v15  ;;  %305 = vmatpush.msra.mxu1 %v238_v16  ;;  %v496_v15 = vld [vmem:[%s1345_s1 + $0x388] sm:$0xff]  ;;  %v384_v16 = vld [vmem:[%s1345_s1 + $0x200] sm:$0xff] }
  0x42   : > { %511 = vmatpush.msrb.mxu3 %v510_v17  ;;  %401 = vmatpush.msrb.mxu0 %v398_v18  ;;  %v422_v17 = vld [vmem:[%s1345_s1 + $0x288] sm:$0xff]  ;;  %v495_v18 = vld [vmem:[%s1345_s1 + $0x380] sm:$0xff] }
  0x43   : > { %437 = vmatpush.msrb.mxu1 %v436_v19  ;;  %478 = vmatpush.msrb.mxu2 %v469_v20  ;;  %v421_v20 = vld [vmem:[%s1345_s1 + $0x280] sm:$0xff] }
  0x44   : > { %512 = vmatpush.msrb.mxu3 %v509_v21  ;;  %402 = vmatpush.msrb.mxu0 %v397_v22 }
  0x45   : > { %438 = vmatpush.msrb.mxu1 %v435_v23  ;;  %479 = vmatpush.msrb.mxu2 %v468_v24  ;;  %v818_v24 = vmov 1.0  }
  0x46   : > { %513 = vmatpush.msrb.mxu3 %v508_v25  ;;  %403 = vmatpush.msrb.mxu0 %v396_v26 }
  0x47   : > { %439 = vmatpush.msrb.mxu1 %v434_v27  ;;  %480 = vmatpush.msrb.mxu2 %v467_v28 }
  0x48   : > { %514 = vmatpush.msrb.mxu3 %v507_v29  ;;  %404 = vmatpush.msrb.mxu0 %v395_v30 }
  0x49   : > { %440 = vmatpush.msrb.mxu1 %v433_v31  ;;  %481 = vmatpush.msrb.mxu2 %v466_v32 }
  0x4a   : > { %515 = vmatpush.msrb.mxu3 %v506_v33  ;;  %405 = vmatpush.msrb.mxu0 %v394_v34 }
  0x4b   : > { %441 = vmatpush.msrb.mxu1 %v432_v35  ;;  %482 = vmatpush.msrb.mxu2 %v465_v36 }
  0x4c   : > { %516 = vmatpush.msrb.mxu3 %v505_v37  ;;  %406 = vmatpush.msrb.mxu0 %v393_v38 }
  0x4d   : > { %442 = vmatpush.msrb.mxu1 %v431_v39  ;;  %483 = vmatpush.msrb.mxu2 %v464_v40 }
  0x4e   : > { %517 = vmatpush.msrb.mxu3 %v504_v42  ;;  %407 = vmatpush.msrb.mxu0 %v392_v44 }
  0x4f   : > { %443 = vmatpush.msrb.mxu1 %v430_v45  ;;  %484 = vmatpush.msrb.mxu2 %v463_v46 }
  0x50   : > { %518 = vmatpush.msrb.mxu3 %v503_v47  ;;  %408 = vmatpush.msrb.mxu0 %v391_v48 }
  0x51   : > { %444 = vmatpush.msrb.mxu1 %v429_v49  ;;  %485 = vmatpush.msrb.mxu2 %v462_v50 }
  0x52   : > { %519 = vmatpush.msrb.mxu3 %v502_v51  ;;  %409 = vmatpush.msrb.mxu0 %v390_v52  ;;  %v819_v51 = vmov 32.0  }
  0x53   : > { %445 = vmatpush.msrb.mxu1 %v428_v53  ;;  %486 = vmatpush.msrb.mxu2 %v461_v55  ;;  %738 = vrcp.f32 %v819_v51 }
  0x54   : > { %520 = vmatpush.msrb.mxu3 %v501_v56  ;;  %410 = vmatpush.msrb.mxu0 %v389_v57 }
  0x55   : > { %446 = vmatpush.msrb.mxu1 %v427_v58  ;;  %487 = vmatpush.msrb.mxu2 %v460_v59 }
  0x56   : > { %521 = vmatpush.msrb.mxu3 %v500_v60  ;;  %411 = vmatpush.msrb.mxu0 %v388_v61 }
  0x57   : > { %447 = vmatpush.msrb.mxu1 %v426_v62  ;;  %488 = vmatpush.msrb.mxu2 %v459_v63 }
  0x58   : > { %522 = vmatpush.msrb.mxu3 %v499_v3  ;;  %412 = vmatpush.msrb.mxu0 %v387_v4 }
  0x59   : > { %448 = vmatpush.msrb.mxu1 %v425_v5  ;;  %489 = vmatpush.msrb.mxu2 %v458_v6  ;;  %v739_v52 = vpop.eup %738 }
  0x5a   : > { %523 = vmatpush.msrb.mxu3 %v498_v8  ;;  %413 = vmatpush.msrb.mxu0 %v386_v9  ;;  %v537_v53 = vmul.f32 32.0, %v739_v52  ;;  %vm541_vm12 = vweird.f32 %v739_v52  ;;  %v736_v8 = vld [vmem:[%s1346_s2] ss:$0 sm:$0xff] }
  0x5b   : > { %449 = vmatpush.msrb.mxu1 %v424_v10 }
  0x5c   : > { %524 = vmatpush.msrb.mxu3 %v497_v12  ;;  %414 = vmatpush.msrb.mxu0 %v385_v13 }
  0x5d   : > { %450 = vmatpush.msrb.mxu1 %v423_v14 }
  0x5e   : > { %525 = vmatpush.msrb.mxu3 %v496_v15  ;;  %415 = vmatpush.msrb.mxu0 %v384_v16 }
  0x5f   : > { %451 = vmatpush.msrb.mxu1 %v422_v17 }
  0x60   : > { %526 = vmatpush.msrb.mxu3 %v495_v18 }
  0x61   : > { %452 = vmatpush.msrb.mxu1 %v421_v20 }
  0x73   : > { %v171_v41 = vpop.permute.xlu2 %170 }
  0x74   : > { %vm172_vm0 = vcmp.eq.s32.totalorder %v1218_v54, %v171_v41 }
  0x75   : > { %v650_v1 = vsel %vm172_vm0, 1.0, %v817_v0 }
  0x7d   : > { %v177_v2 = vpop.permute.xlu2 %176 }
  0x7e   : > { %vm178_vm1 = vcmp.eq.s32.totalorder %v1218_v54, %v177_v2 }
  0x7f   : > { %v651_v7 = vsel %vm178_vm1, 1.0, %v817_v0 }
  0x80   : > { %v181_v11 = vadd.f32 %v651_v7, %v650_v1 }
  0x82   : > { %306 = vmatmul.f32.vlgmr.msra.gmra.mxu1 %v181_v11  ;;  %v737_v11 = vld [vmem:[%s1346_s2 + $0x1] ss:$0 sm:$0xff] }
  0x86   : > { %v228_v19 = vpop.permute.xlu2 %227 }
  0x87   : > { %vm229_vm7 = vcmp.eq.s32.totalorder %v1218_v54, %v228_v19 }
  0x8a   : > { %v197_v21 = vpop.permute.xlu1 %196  ;;  %v184_v22 = vpop.permute.xlu0 %183 }
  0x8b   : > { %vm185_vm3 = vcmp.eq.s32.totalorder %v1218_v54, %v184_v22  ;;  %vm198_vm4 = vcmp.eq.s32.totalorder %v1218_v54, %v197_v21 }
  0x8c   : > { %v652_v27 = vsel %vm185_vm3, 1.0, %v817_v0  ;;  %v654_v30 = vsel %vm198_vm4, 1.0, %v817_v0 }
  0x8f   : > { %v222_v23 = vpop.permute.xlu2 %221 }
  0x90   : > { %vm223_vm2 = vcmp.eq.s32.totalorder %v1218_v54, %v222_v23 }
  0x91   : > { %664 = vmatmul.msk.f32.vlgmr.msrb.gmra.mxu1 %vm223_vm2, %v818_v24 }
  0x93   : > { %v204_v25 = vpop.permute.xlu1 %203  ;;  %v190_v26 = vpop.permute.xlu0 %189 }
  0x94   : > { %vm205_vm5 = vcmp.eq.s32.totalorder %v1218_v54, %v204_v25  ;;  %vm191_vm6 = vcmp.eq.s32.totalorder %v1218_v54, %v190_v26 }
  0x95   : > { %v653_v28 = vsel %vm191_vm6, 1.0, %v817_v0  ;;  %661 = vmatmul.msk.f32.vlgmr.msra.gmra.mxu2 %vm205_vm5, %v818_v24 }
  0x96   : > { %v194_v29 = vadd.f32 %v653_v28, %v652_v27 }
  0x98   : > { %v201_v31 = vadd.f32 %v654_v30, %v194_v29 }
  0x9a   : > { %286 = vmatmul.f32.vlgmr.msra.gmra.mxu0 %v201_v31 }
  0x9c   : > { %v210_v32 = vpop.permute.xlu1 %209  ;;  %v216_v33 = vpop.permute.xlu0 %215 }
  0x9d   : > { %vm211_vm8 = vcmp.eq.s32.totalorder %v1218_v54, %v210_v32  ;;  %665 = vmatmul.msk.f32.vlgmr.msrb.gmra.mxu2 %vm229_vm7, %v818_v24  ;;  %vm217_vm9 = vcmp.eq.s32.totalorder %v1218_v54, %v216_v33 }
  0x9e   : > { %662 = vmatmul.msk.f32.vlgmr.msra.gmra.mxu3 %vm211_vm8, %v818_v24 }
  0xa2   : > { %663 = vmatmul.msk.f32.vlgmr.msrb.gmra.mxu0 %vm217_vm9, %v818_v24 }
  0xa5   : > { %v234_v34 = vpop.permute.xlu1 %233 }
  0xa6   : > { %vm235_vm10 = vcmp.eq.s32.totalorder %v1218_v54, %v234_v34  ;;  %v538_v54 = vsub.f32 1.0, %v537_v53 }
  0xa7   : > { %666 = vmatmul.msk.f32.vlgmr.msrb.gmra.mxu3 %vm235_vm10, %v818_v24 }
  0xa8   : > { %v539_v55 = vmul.f32 %v739_v52, %v538_v54 }
  0xaa   : > { %v540_v56 = vadd.f32 %v739_v52, %v539_v55 }
  0xac   : > { %v542_v57 = vsel %vm541_vm12, %v739_v52, %v540_v56 }
  0xff   : > { %v307_v36 = vpop.f32.mrf.mxu1 }
 0x10e   : > { %v454_v43 = vpop.f32.mrf.mxu1 }
 0x117   : > { %v287_v35 = vpop.f32.mrf.mxu0 }
 0x118   : > { %v308_v37 = vadd.f32 %v307_v36, %v287_v35  ;;  %v343_v38 = vpop.f32.mrf.mxu2 }
 0x11a   : > { %v346_v39 = vadd.f32 %v343_v38, %v308_v37 }
 0x11f   : > { %v417_v41 = vpop.f32.mrf.mxu0 }
 0x120   : > { %v491_v46 = vpop.f32.mrf.mxu2 }
 0x121   : > { %v380_v40 = vpop.f32.mrf.mxu3 }
 0x122   : > { %v383_v42 = vadd.f32 %v380_v40, %v346_v39 }
 0x124   : > { %v420_v44 = vadd.f32 %v417_v41, %v383_v42 }
 0x126   : > { %v457_v45 = vadd.f32 %v454_v43, %v420_v44 }
 0x128   : > { %v494_v47 = vadd.f32 %v491_v46, %v457_v45 }
 0x12a   : > { %v528_v48 = vpop.f32.mrf.mxu3 }
 0x12b   : > { %v531_v49 = vadd.f32 %v528_v48, %v494_v47 }
 0x12d   : > { %v533_v50 = vsel %vm532_vm11, %v531_v49, 0.0 }
 0x12e   : > { %534 = vadd.xlane.f32.xlu1 %v533_v50 }
 0x1a1   : > { %v535_v58 = vpop.xlane.xlu1 %534 }
 0x1a2   : > { %v543_v59 = vmul.f32 %v542_v57, %v535_v58 }
 0x1a4   : > { %v544_v60 = vsub.f32 %v531_v49, %v543_v59 }
 0x1a6   : > { %v545_v61 = vmul.f32 %v544_v60, %v544_v60 }
 0x1a8   : > { %v546_v62 = vsel %vm532_vm11, %v545_v61, 0.0 }
 0x1a9   : > { %547 = vadd.xlane.f32.xlu2 %v546_v62 }
 0x21c   : > { %v548_v63 = vpop.xlane.xlu2 %547 }
 0x21d   : > { %v549_v0 = vmul.f32 %v548_v63, %v542_v57 }
 0x21f   : > { %v550_v1 = vadd.f32 1e-12, %v549_v0 }
 0x221   : > { %740 = vrsqrt.f32 %v550_v1  ;;  %vm557_vm14 = vweird.f32 %v550_v1 }
 0x227   : > { %v741_v2 = vpop.eup %740 }
 0x228   : > { %v552_v3 = vmul.f32 %v741_v2, %v550_v1  ;;  %vm558_vm13 = vweird.f32 %v741_v2 }
 0x229   : > { %vm559_vm15 = vmor %vm557_vm14, %vm558_vm13 }
 0x22a   : > { %v553_v4 = vmul.f32 %v741_v2, %v552_v3 }
 0x22c   : > { %v554_v5 = vmul.f32 0.5, %v553_v4 }
 0x22e   : > { %v555_v6 = vsub.f32 1.5, %v554_v5 }
 0x230   : > { %v556_v7 = vmul.f32 %v741_v2, %v555_v6 }
 0x232   : > { %v560_v9 = vsel %vm559_vm15, %v741_v2, %v556_v7 }
 0x233   : > { %v561_v10 = vmul.f32 %v560_v9, %v544_v60 }
 0x235   : > { %v564_v12 = vmul.f32 %v736_v8, %v561_v10 }
 0x237   : > { %v567_v13 = vadd.f32 %v737_v11, %v564_v12 }
 0x239   : > { %568 = vst.msk [vmem:[%s161_s25] sm:$0xff] %vm532_vm11, %v567_v13 }
 0x23a   : > { %769 = shalt.err (!%p766_p3)
}
 0x23b   : > { %671 = dma.vmem_to_hbm [thread:$0]  (%p878_p5), %s583_s16, 128, %s585_s26, %s570_s27  }
 0x23c PF: > { %p677_p4 = scmp.ge.s32.totalorder %s804_s15, 2  ;;  %s596_s6 = sand.u32 1, %s792_s12  }
 0x23d   : > { %s597_s9 = scalar_lea.sflag [#allocation3], %s596_s6 }
 0x23e   : > { %p674_p7 = pnand %p677_p4, %p882_p6 }
 0x240   : > { %p675_p8 = pneg %p674_p7 }
 0x242   : > { %787 = dma.done.wait (%p675_p8), %s597_s9, 128  }
 0x243   : > { %789 = vsyncadd (%p675_p8), %s597_s9, 4294967168  ;;  %p13_p9 = scmp.ge.s32.totalorder %s865_s18, 4   ;;  %s1350_s12 = smov %s796_s13 }
 0x244   : > { %s1351_s13 = smov %s800_s14  ;;  %s1352_s14 = smov %s876_s21 }
 0x245   : > { %s1353_s15 = smov %s865_s18  ;;  %15 = sbr.rel (!%p13_p9) target bundleno = 3 (0x3), region = 67 }
 0x24a   :  { %603 = vsyncpa [#allocation3], 1 }
 0x24b   :  { %605 = vsyncpa [#allocation3 + $0x1], 1 }

</bundles_post_ra>
